<compile_context>
chip_gen: v5e
topology: v5e:2x2
jax: 0.10.0
libtpu: 0.0.40
codegen_flags: <defaults>
</compile_context>

<pallas_src>
import numpy as np
import jax
import jax.numpy as jnp
from jax.experimental import pallas as pl
from jax.experimental.pallas import tpu as pltpu


# Host-side row gather pattern for conv1: output rows ordered evens-then-odds so the
# H-pool is a contiguous row-half max; each output row gets its 5 kernel-row strips
# concatenated along lanes (420 = 5 * 84).
_ORD = np.concatenate([np.arange(0, 24, 2), np.arange(1, 24, 2)])              # (24,)
_ROW_IDX = (_ORD[:, None] + np.arange(5)[None, :]).reshape(-1).astype(np.int32)  # (120,)


# ------------------------------ fused kernel --------------------------------
# Per grid step (one image):
#   x_ref   : (1, 24, 420)  gathered conv1 LHS, col = i*84 + w*3 + c, row r -> ho = ord[r]
#   w1_ref  : (420, 144)    conv1 im2col weights, out col = (wo%2)*72 + (wo//2)*6 + o
#   b1_ref  : (1, 144)      conv1 bias tiled over output columns
#   w2r_ref : (5, 72, 128)  conv2 banded weights, out col = (wo2%2)*64 + (wo2//2)*16 + o2
#   b2_ref  : (1, 128)      conv2 bias tiled
#   fc1_ref : (4, 64, 120)  fc1 weights, permuted to our (hp2, wp2*16+o2) feature order
#   fc2_ref : (120, 84)     fc2^T
#   fc3_ref : (84, 128)     fc3^T zero-padded to 128 lanes
#   o_ref   : (1, 1, 128)   padded logits (cols 4..127 are zero)

def fused_net_kernel(x_ref, w1_ref, b1_ref, w2r_ref, b2_ref,
                     fc1_ref, fc2_ref, fc3_ref, o_ref):
    f32 = jnp.float32

    # ---- conv1 + bias + ReLU: one matmul (im2col folded into host packing) ----
    x0 = x_ref[0]                                            # (24, 420)
    a1 = jnp.maximum(jnp.dot(x0, w1_ref[...], preferred_element_type=f32)
                     + b1_ref[...], 0.0)                     # (24, 144)

    # ---- fused 2x2 max-pool #1 (both halves are contiguous by construction) ----
    w1m = jnp.maximum(a1[:, 0:72], a1[:, 72:144])            # W-pool -> (24, 72)
    p1 = jnp.maximum(w1m[0:12, :], w1m[12:24, :])            # H-pool -> (12, 72), col = wp*6 + c

    # ---- conv2 + bias + ReLU: 5 banded row-strip matmuls ----
    acc2 = jnp.dot(p1[0:8, :], w2r_ref[0], preferred_element_type=f32)
    for i in range(1, 5):
        acc2 = acc2 + jnp.dot(p1[i:i + 8, :], w2r_ref[i], preferred_element_type=f32)
    a2 = jnp.maximum(acc2 + b2_ref[...], 0.0)                # (8, 128)

    # ---- fused 2x2 max-pool #2; H-pool folded into the fc1 accumulation ----
    w2m = jnp.maximum(a2[:, 0:64], a2[:, 64:128])            # (8, 64), col = wp2*16 + o2
    h = jnp.dot(jnp.maximum(w2m[0:1, :], w2m[1:2, :]), fc1_ref[0],
                preferred_element_type=f32)                  # (1, 120)
    for hp2 in range(1, 4):
        row = jnp.maximum(w2m[2 * hp2:2 * hp2 + 1, :],
                          w2m[2 * hp2 + 1:2 * hp2 + 2, :])   # (1, 64)
        h = h + jnp.dot(row, fc1_ref[hp2], preferred_element_type=f32)

    # ---- MLP head (bias-free, matches nn.Linear(..., bias=False)) ----
    h = jnp.maximum(h, 0.0)
    h = jnp.maximum(jnp.dot(h, fc2_ref[...], preferred_element_type=f32), 0.0)  # (1, 84)
    o_ref[0] = jnp.dot(h, fc3_ref[...], preferred_element_type=f32)             # (1, 128)


# ------------------------------- forward ------------------------------------

@jax.jit
def net_forward(packed, x_nchw):
    B = x_nchw.shape[0]
    # Per-call host glue: NCHW -> NHWC rows, then gather the 5 kernel-row strips per
    # output row (evens-then-odds) and concatenate them along lanes -> (B, 24, 420).
    x2d = jnp.transpose(x_nchw, (0, 2, 3, 1)).reshape(B, 28, 28 * 3)
    x_cat = jnp.take(x2d, jnp.asarray(_ROW_IDX), axis=1).reshape(B, 24, 420)

    out = pl.pallas_call(
        fused_net_kernel,
        out_shape=jax.ShapeDtypeStruct((B, 1, 128), jnp.float32),
        grid=(B,),
        in_specs=[
            pl.BlockSpec((1, 24, 420), lambda b: (b, 0, 0)),    # gathered image b
            pl.BlockSpec((420, 144), lambda b: (0, 0)),         # conv1 im2col weights
            pl.BlockSpec((1, 144), lambda b: (0, 0)),           # conv1 bias row
            pl.BlockSpec((5, 72, 128), lambda b: (0, 0, 0)),    # conv2 banded weights
            pl.BlockSpec((1, 128), lambda b: (0, 0)),           # conv2 bias row
            pl.BlockSpec((4, 64, 120), lambda b: (0, 0, 0)),    # fc1 (permuted, split by hp2)
            pl.BlockSpec((120, 84), lambda b: (0, 0)),          # fc2^T
            pl.BlockSpec((84, 128), lambda b: (0, 0)),          # fc3^T, zero-padded lanes
        ],
        out_specs=pl.BlockSpec((1, 1, 128), lambda b: (b, 0, 0)),
        compiler_params=pltpu.CompilerParams(
            dimension_semantics=("parallel",)),
    )(x_cat, packed["w1c"], packed["b1r"], packed["w2r"], packed["b2r"],
      packed["fc1"], packed["fc2"], packed["fc3"])
    return out.reshape(B, 128)[:, :4]


# ----------------- one-time host-side weight packing (at init) ---------------

def prepare_params(params):
    w1 = np.asarray(params["conv1_w"], np.float32)   # (6, 3, 5, 5)
    b1 = np.asarray(params["conv1_b"], np.float32)   # (6,)
    w2 = np.asarray(params["conv2_w"], np.float32)   # (16, 6, 5, 5)
    b2 = np.asarray(params["conv2_b"], np.float32)   # (16,)
    f1 = np.asarray(params["fc1_w"], np.float32)     # (120, 256)
    f2 = np.asarray(params["fc2_w"], np.float32)     # (84, 120)
    f3 = np.asarray(params["fc3_w"], np.float32)     # (4, 84)

    # conv1: per-kernel-row banded matrices, then concatenated along the contraction
    # dim to match the host-gathered LHS (col = i*84 + w*3 + c).  Output col packs
    # even/odd wo in separate halves for free W-pooling:
    # col = (wo % 2)*72 + (wo // 2)*6 + o.
    w1r = np.zeros((5, 84, 144), np.float32)
    for i in range(5):
        for j in range(5):
            blk = w1[:, :, i, j].T                    # (3, 6)  [c, o]
            for wo in range(24):
                col = (wo % 2) * 72 + (wo // 2) * 6
                w = wo + j
                w1r[i, w * 3:w * 3 + 3, col:col + 6] = blk
    w1c = np.ascontiguousarray(w1r.reshape(5 * 84, 144))     # (420, 144)
    b1r = np.tile(b1, 24).reshape(1, 144).astype(np.float32)

    # conv2: input col = wpi*6 + c; output col = (wo2 % 2)*64 + (wo2 // 2)*16 + o2.
    w2r = np.zeros((5, 72, 128), np.float32)
    for i in range(5):
        for j in range(5):
            blk = w2[:, :, i, j].T                    # (6, 16) [c, o2]
            for wo in range(8):
                col = (wo % 2) * 64 + (wo // 2) * 16
                wpi = wo + j
                w2r[i, wpi * 6:wpi * 6 + 6, col:col + 16] = blk
    b2r = np.tile(b2, 8).reshape(1, 128).astype(np.float32)

    # fc1: PyTorch flatten order is (c, h, w) -> f_pt = o2*16 + hp2*4 + wp2.
    # Our pooled feature row at hp2 has col = wp2*16 + o2; permute once here.
    fc1 = np.zeros((4, 64, 120), np.float32)
    for hp2 in range(4):
        for wp2 in range(4):
            for o2 in range(16):
                fc1[hp2, wp2 * 16 + o2, :] = f1[:, o2 * 16 + hp2 * 4 + wp2]

    fc2 = np.ascontiguousarray(f2.T)                  # (120, 84)
    fc3 = np.zeros((84, 128), np.float32)             # lane-dense output: pad 4 -> 128
    fc3[:, :4] = f3.T

    packed = dict(w1c=w1c, b1r=b1r, w2r=w2r, b2r=b2r, fc1=fc1, fc2=fc2, fc3=fc3)
    return {k: jnp.asarray(v) for k, v in packed.items()}


# ----------------------- deterministic parameter init -----------------------

def init_params(key):
    def u(k, shape, fan_in):
        bound = 1.0 / np.sqrt(fan_in)
        return jax.random.uniform(k, shape, jnp.float32, -bound, bound)

    ks = jax.random.split(key, 7)
    return dict(
        conv1_w=u(ks[0], (6, 3, 5, 5), 3 * 5 * 5),
        conv1_b=u(ks[1], (6,), 3 * 5 * 5),
        conv2_w=u(ks[2], (16, 6, 5, 5), 6 * 5 * 5),
        conv2_b=u(ks[3], (16,), 6 * 5 * 5),
        fc1_w=u(ks[4], (120, 16 * 4 * 4), 16 * 4 * 4),
        fc2_w=u(ks[5], (84, 120), 120),
        fc3_w=u(ks[6], (4, 84), 84),
    )


# ------------------------------ pure-JAX reference ---------------------------

def reference(params, x_nchw):
    y = jax.lax.conv_general_dilated(
        x_nchw, params["conv1_w"], (1, 1), "VALID",
        dimension_numbers=("NCHW", "OIHW", "NCHW"))
    y = jax.nn.relu(y + params["conv1_b"][None, :, None, None])
    y = jax.lax.reduce_window(y, -jnp.inf, jax.lax.max,
                              (1, 1, 2, 2), (1, 1, 2, 2), "VALID")
    y = jax.lax.conv_general_dilated(
        y, params["conv2_w"], (1, 1), "VALID",
        dimension_numbers=("NCHW", "OIHW", "NCHW"))
    y = jax.nn.relu(y + params["conv2_b"][None, :, None, None])
    y = jax.lax.reduce_window(y, -jnp.inf, jax.lax.max,
                              (1, 1, 2, 2), (1, 1, 2, 2), "VALID")
    y = y.reshape(y.shape[0], -1)
    y = jax.nn.relu(y @ params["fc1_w"].T)
    y = jax.nn.relu(y @ params["fc2_w"].T)
    return y @ params["fc3_w"].T


if __name__ == "__main__":
    key = jax.random.PRNGKey(0)
    pkey, xkey = jax.random.split(key)
    params = init_params(pkey)
    packed = prepare_params(params)          # one-time weight packing (not per call)
    # Architecture requires 28x28 spatial input (-> 16*4*4 flatten); batch=2.
    x = jax.random.normal(xkey, (2, 3, 28, 28), dtype=jnp.float32)

    out = jax.block_until_ready(net_forward(packed, x))
    ref = jax.block_until_ready(reference(params, x))

    assert out.shape == (2, 4), out.shape
    np.testing.assert_allclose(np.asarray(out), np.asarray(ref), atol=2e-3, rtol=2e-3)
    print("KERNEL_OK")
</pallas_src>

<mosaic_0001>
module attributes {stable_mosaic.version = 11 : i64} {
  func.func @fused_net_kernel(%arg0: i32, %arg1: memref<1x24x420xf32, #tpu.memory_space<vmem>>, %arg2: memref<420x144xf32, #tpu.memory_space<vmem>>, %arg3: memref<1x144xf32, #tpu.memory_space<vmem>>, %arg4: memref<5x72x128xf32, #tpu.memory_space<vmem>>, %arg5: memref<1x128xf32, #tpu.memory_space<vmem>>, %arg6: memref<4x64x120xf32, #tpu.memory_space<vmem>>, %arg7: memref<120x84xf32, #tpu.memory_space<vmem>>, %arg8: memref<84x128xf32, #tpu.memory_space<vmem>>, %arg9: memref<1x1x128xf32, #tpu.memory_space<vmem>>) attributes {dimension_semantics = [#tpu.dimension_semantics<parallel>], iteration_bounds = array<i64: 2>, scalar_prefetch = 0 : i64, scratch_operands = 0 : i64, tpu.core_type = #tpu.core_type<tc>, window_params = [{transform_indices = @transform_0, window_bounds = array<i64: 1, 24, 420>}, {pipeline_mode = #tpu.pipeline_mode<synchronous>, transform_indices = @transform_1, window_bounds = array<i64: 420, 144>}, {pipeline_mode = #tpu.pipeline_mode<synchronous>, transform_indices = @transform_2, window_bounds = array<i64: 1, 144>}, {pipeline_mode = #tpu.pipeline_mode<synchronous>, transform_indices = @transform_3, window_bounds = array<i64: 5, 72, 128>}, {pipeline_mode = #tpu.pipeline_mode<synchronous>, transform_indices = @transform_4, window_bounds = array<i64: 1, 128>}, {pipeline_mode = #tpu.pipeline_mode<synchronous>, transform_indices = @transform_5, window_bounds = array<i64: 4, 64, 120>}, {pipeline_mode = #tpu.pipeline_mode<synchronous>, transform_indices = @transform_6, window_bounds = array<i64: 120, 84>}, {pipeline_mode = #tpu.pipeline_mode<synchronous>, transform_indices = @transform_7, window_bounds = array<i64: 84, 128>}, {transform_indices = @transform_8, window_bounds = array<i64: 1, 1, 128>}]} {
    %c0 = arith.constant 0 : index
    %c0_0 = arith.constant 0 : index
    %c0_1 = arith.constant 0 : index
    %0 = vector.load %arg1[%c0, %c0_0, %c0_1] : memref<1x24x420xf32, #tpu.memory_space<vmem>>, vector<1x24x420xf32>
    %1 = vector.shape_cast %0 : vector<1x24x420xf32> to vector<24x420xf32>
    %c0_2 = arith.constant 0 : index
    %c0_3 = arith.constant 0 : index
    %2 = vector.load %arg2[%c0_2, %c0_3] : memref<420x144xf32, #tpu.memory_space<vmem>>, vector<420x144xf32>
    %cst = arith.constant dense<0.000000e+00> : vector<24x144xf32>
    %3 = tpu.matmul %1, %2, %cst {dimension_numbers = #tpu.dot_dimension_numbers<[1], [0], [0], [1], [0, 0, 1, 1], [], []>} : vector<24x420xf32>, vector<420x144xf32>, vector<24x144xf32> -> vector<24x144xf32>
    %c0_4 = arith.constant 0 : index
    %c0_5 = arith.constant 0 : index
    %4 = vector.load %arg3[%c0_4, %c0_5] : memref<1x144xf32, #tpu.memory_space<vmem>>, vector<1x144xf32>
    %5 = vector.broadcast %4 : vector<1x144xf32> to vector<24x144xf32>
    %6 = arith.addf %3, %5 : vector<24x144xf32>
    %cst_6 = arith.constant 0.000000e+00 : f32
    %7 = vector.broadcast %cst_6 : f32 to vector<24x144xf32>
    %8 = arith.maximumf %6, %7 : vector<24x144xf32>
    %9 = vector.extract_strided_slice %8 {offsets = [0, 0], sizes = [24, 72], strides = [1, 1]} : vector<24x144xf32> to vector<24x72xf32>
    %10 = vector.extract_strided_slice %8 {offsets = [0, 72], sizes = [24, 72], strides = [1, 1]} : vector<24x144xf32> to vector<24x72xf32>
    %11 = arith.maximumf %9, %10 : vector<24x72xf32>
    %12 = vector.extract_strided_slice %11 {offsets = [0, 0], sizes = [12, 72], strides = [1, 1]} : vector<24x72xf32> to vector<12x72xf32>
    %13 = vector.extract_strided_slice %11 {offsets = [12, 0], sizes = [12, 72], strides = [1, 1]} : vector<24x72xf32> to vector<12x72xf32>
    %14 = arith.maximumf %12, %13 : vector<12x72xf32>
    %15 = vector.extract_strided_slice %14 {offsets = [0, 0], sizes = [8, 72], strides = [1, 1]} : vector<12x72xf32> to vector<8x72xf32>
    %c0_7 = arith.constant 0 : index
    %c0_8 = arith.constant 0 : index
    %c0_9 = arith.constant 0 : index
    %16 = vector.load %arg4[%c0_7, %c0_8, %c0_9] : memref<5x72x128xf32, #tpu.memory_space<vmem>>, vector<1x72x128xf32>
    %17 = vector.shape_cast %16 : vector<1x72x128xf32> to vector<72x128xf32>
    %cst_10 = arith.constant dense<0.000000e+00> : vector<8x128xf32>
    %18 = tpu.matmul %15, %17, %cst_10 {dimension_numbers = #tpu.dot_dimension_numbers<[1], [0], [0], [1], [0, 0, 1, 1], [], []>} : vector<8x72xf32>, vector<72x128xf32>, vector<8x128xf32> -> vector<8x128xf32>
    %19 = vector.extract_strided_slice %14 {offsets = [1, 0], sizes = [8, 72], strides = [1, 1]} : vector<12x72xf32> to vector<8x72xf32>
    %c1 = arith.constant 1 : index
    %c0_11 = arith.constant 0 : index
    %c0_12 = arith.constant 0 : index
    %20 = vector.load %arg4[%c1, %c0_11, %c0_12] : memref<5x72x128xf32, #tpu.memory_space<vmem>>, vector<1x72x128xf32>
    %21 = vector.shape_cast %20 : vector<1x72x128xf32> to vector<72x128xf32>
    %cst_13 = arith.constant dense<0.000000e+00> : vector<8x128xf32>
    %22 = tpu.matmul %19, %21, %cst_13 {dimension_numbers = #tpu.dot_dimension_numbers<[1], [0], [0], [1], [0, 0, 1, 1], [], []>} : vector<8x72xf32>, vector<72x128xf32>, vector<8x128xf32> -> vector<8x128xf32>
    %23 = arith.addf %18, %22 : vector<8x128xf32>
    %24 = vector.extract_strided_slice %14 {offsets = [2, 0], sizes = [8, 72], strides = [1, 1]} : vector<12x72xf32> to vector<8x72xf32>
    %c2 = arith.constant 2 : index
    %c0_14 = arith.constant 0 : index
    %c0_15 = arith.constant 0 : index
    %25 = vector.load %arg4[%c2, %c0_14, %c0_15] : memref<5x72x128xf32, #tpu.memory_space<vmem>>, vector<1x72x128xf32>
    %26 = vector.shape_cast %25 : vector<1x72x128xf32> to vector<72x128xf32>
    %cst_16 = arith.constant dense<0.000000e+00> : vector<8x128xf32>
    %27 = tpu.matmul %24, %26, %cst_16 {dimension_numbers = #tpu.dot_dimension_numbers<[1], [0], [0], [1], [0, 0, 1, 1], [], []>} : vector<8x72xf32>, vector<72x128xf32>, vector<8x128xf32> -> vector<8x128xf32>
    %28 = arith.addf %23, %27 : vector<8x128xf32>
    %29 = vector.extract_strided_slice %14 {offsets = [3, 0], sizes = [8, 72], strides = [1, 1]} : vector<12x72xf32> to vector<8x72xf32>
    %c3 = arith.constant 3 : index
    %c0_17 = arith.constant 0 : index
    %c0_18 = arith.constant 0 : index
    %30 = vector.load %arg4[%c3, %c0_17, %c0_18] : memref<5x72x128xf32, #tpu.memory_space<vmem>>, vector<1x72x128xf32>
    %31 = vector.shape_cast %30 : vector<1x72x128xf32> to vector<72x128xf32>
    %cst_19 = arith.constant dense<0.000000e+00> : vector<8x128xf32>
    %32 = tpu.matmul %29, %31, %cst_19 {dimension_numbers = #tpu.dot_dimension_numbers<[1], [0], [0], [1], [0, 0, 1, 1], [], []>} : vector<8x72xf32>, vector<72x128xf32>, vector<8x128xf32> -> vector<8x128xf32>
    %33 = arith.addf %28, %32 : vector<8x128xf32>
    %34 = vector.extract_strided_slice %14 {offsets = [4, 0], sizes = [8, 72], strides = [1, 1]} : vector<12x72xf32> to vector<8x72xf32>
    %c4 = arith.constant 4 : index
    %c0_20 = arith.constant 0 : index
    %c0_21 = arith.constant 0 : index
    %35 = vector.load %arg4[%c4, %c0_20, %c0_21] : memref<5x72x128xf32, #tpu.memory_space<vmem>>, vector<1x72x128xf32>
    %36 = vector.shape_cast %35 : vector<1x72x128xf32> to vector<72x128xf32>
    %cst_22 = arith.constant dense<0.000000e+00> : vector<8x128xf32>
    %37 = tpu.matmul %34, %36, %cst_22 {dimension_numbers = #tpu.dot_dimension_numbers<[1], [0], [0], [1], [0, 0, 1, 1], [], []>} : vector<8x72xf32>, vector<72x128xf32>, vector<8x128xf32> -> vector<8x128xf32>
    %38 = arith.addf %33, %37 : vector<8x128xf32>
    %c0_23 = arith.constant 0 : index
    %c0_24 = arith.constant 0 : index
    %39 = vector.load %arg5[%c0_23, %c0_24] : memref<1x128xf32, #tpu.memory_space<vmem>>, vector<1x128xf32>
    %40 = vector.broadcast %39 : vector<1x128xf32> to vector<8x128xf32>
    %41 = arith.addf %38, %40 : vector<8x128xf32>
    %cst_25 = arith.constant 0.000000e+00 : f32
    %42 = vector.broadcast %cst_25 : f32 to vector<8x128xf32>
    %43 = arith.maximumf %41, %42 : vector<8x128xf32>
    %44 = vector.extract_strided_slice %43 {offsets = [0, 0], sizes = [8, 64], strides = [1, 1]} : vector<8x128xf32> to vector<8x64xf32>
    %45 = vector.extract_strided_slice %43 {offsets = [0, 64], sizes = [8, 64], strides = [1, 1]} : vector<8x128xf32> to vector<8x64xf32>
    %46 = arith.maximumf %44, %45 : vector<8x64xf32>
    %47 = vector.extract_strided_slice %46 {offsets = [0, 0], sizes = [1, 64], strides = [1, 1]} : vector<8x64xf32> to vector<1x64xf32>
    %48 = vector.extract_strided_slice %46 {offsets = [1, 0], sizes = [1, 64], strides = [1, 1]} : vector<8x64xf32> to vector<1x64xf32>
    %49 = arith.maximumf %47, %48 : vector<1x64xf32>
    %c0_26 = arith.constant 0 : index
    %c0_27 = arith.constant 0 : index
    %c0_28 = arith.constant 0 : index
    %50 = vector.load %arg6[%c0_26, %c0_27, %c0_28] : memref<4x64x120xf32, #tpu.memory_space<vmem>>, vector<1x64x120xf32>
    %51 = vector.shape_cast %50 : vector<1x64x120xf32> to vector<64x120xf32>
    %cst_29 = arith.constant dense<0.000000e+00> : vector<1x120xf32>
    %52 = tpu.matmul %49, %51, %cst_29 {dimension_numbers = #tpu.dot_dimension_numbers<[1], [0], [0], [1], [0, 0, 1, 1], [], []>} : vector<1x64xf32>, vector<64x120xf32>, vector<1x120xf32> -> vector<1x120xf32>
    %53 = vector.extract_strided_slice %46 {offsets = [2, 0], sizes = [1, 64], strides = [1, 1]} : vector<8x64xf32> to vector<1x64xf32>
    %54 = vector.extract_strided_slice %46 {offsets = [3, 0], sizes = [1, 64], strides = [1, 1]} : vector<8x64xf32> to vector<1x64xf32>
    %55 = arith.maximumf %53, %54 : vector<1x64xf32>
    %c1_30 = arith.constant 1 : index
    %c0_31 = arith.constant 0 : index
    %c0_32 = arith.constant 0 : index
    %56 = vector.load %arg6[%c1_30, %c0_31, %c0_32] : memref<4x64x120xf32, #tpu.memory_space<vmem>>, vector<1x64x120xf32>
    %57 = vector.shape_cast %56 : vector<1x64x120xf32> to vector<64x120xf32>
    %cst_33 = arith.constant dense<0.000000e+00> : vector<1x120xf32>
    %58 = tpu.matmul %55, %57, %cst_33 {dimension_numbers = #tpu.dot_dimension_numbers<[1], [0], [0], [1], [0, 0, 1, 1], [], []>} : vector<1x64xf32>, vector<64x120xf32>, vector<1x120xf32> -> vector<1x120xf32>
    %59 = arith.addf %52, %58 : vector<1x120xf32>
    %60 = vector.extract_strided_slice %46 {offsets = [4, 0], sizes = [1, 64], strides = [1, 1]} : vector<8x64xf32> to vector<1x64xf32>
    %61 = vector.extract_strided_slice %46 {offsets = [5, 0], sizes = [1, 64], strides = [1, 1]} : vector<8x64xf32> to vector<1x64xf32>
    %62 = arith.maximumf %60, %61 : vector<1x64xf32>
    %c2_34 = arith.constant 2 : index
    %c0_35 = arith.constant 0 : index
    %c0_36 = arith.constant 0 : index
    %63 = vector.load %arg6[%c2_34, %c0_35, %c0_36] : memref<4x64x120xf32, #tpu.memory_space<vmem>>, vector<1x64x120xf32>
    %64 = vector.shape_cast %63 : vector<1x64x120xf32> to vector<64x120xf32>
    %cst_37 = arith.constant dense<0.000000e+00> : vector<1x120xf32>
    %65 = tpu.matmul %62, %64, %cst_37 {dimension_numbers = #tpu.dot_dimension_numbers<[1], [0], [0], [1], [0, 0, 1, 1], [], []>} : vector<1x64xf32>, vector<64x120xf32>, vector<1x120xf32> -> vector<1x120xf32>
    %66 = arith.addf %59, %65 : vector<1x120xf32>
    %67 = vector.extract_strided_slice %46 {offsets = [6, 0], sizes = [1, 64], strides = [1, 1]} : vector<8x64xf32> to vector<1x64xf32>
    %68 = vector.extract_strided_slice %46 {offsets = [7, 0], sizes = [1, 64], strides = [1, 1]} : vector<8x64xf32> to vector<1x64xf32>
    %69 = arith.maximumf %67, %68 : vector<1x64xf32>
    %c3_38 = arith.constant 3 : index
    %c0_39 = arith.constant 0 : index
    %c0_40 = arith.constant 0 : index
    %70 = vector.load %arg6[%c3_38, %c0_39, %c0_40] : memref<4x64x120xf32, #tpu.memory_space<vmem>>, vector<1x64x120xf32>
    %71 = vector.shape_cast %70 : vector<1x64x120xf32> to vector<64x120xf32>
    %cst_41 = arith.constant dense<0.000000e+00> : vector<1x120xf32>
    %72 = tpu.matmul %69, %71, %cst_41 {dimension_numbers = #tpu.dot_dimension_numbers<[1], [0], [0], [1], [0, 0, 1, 1], [], []>} : vector<1x64xf32>, vector<64x120xf32>, vector<1x120xf32> -> vector<1x120xf32>
    %73 = arith.addf %66, %72 : vector<1x120xf32>
    %cst_42 = arith.constant 0.000000e+00 : f32
    %74 = vector.broadcast %cst_42 : f32 to vector<1x120xf32>
    %75 = arith.maximumf %73, %74 : vector<1x120xf32>
    %c0_43 = arith.constant 0 : index
    %c0_44 = arith.constant 0 : index
    %76 = vector.load %arg7[%c0_43, %c0_44] : memref<120x84xf32, #tpu.memory_space<vmem>>, vector<120x84xf32>
    %cst_45 = arith.constant dense<0.000000e+00> : vector<1x84xf32>
    %77 = tpu.matmul %75, %76, %cst_45 {dimension_numbers = #tpu.dot_dimension_numbers<[1], [0], [0], [1], [0, 0, 1, 1], [], []>} : vector<1x120xf32>, vector<120x84xf32>, vector<1x84xf32> -> vector<1x84xf32>
    %cst_46 = arith.constant 0.000000e+00 : f32
    %78 = vector.broadcast %cst_46 : f32 to vector<1x84xf32>
    %79 = arith.maximumf %77, %78 : vector<1x84xf32>
    %c0_47 = arith.constant 0 : index
    %c0_48 = arith.constant 0 : index
    %80 = vector.load %arg8[%c0_47, %c0_48] : memref<84x128xf32, #tpu.memory_space<vmem>>, vector<84x128xf32>
    %cst_49 = arith.constant dense<0.000000e+00> : vector<1x128xf32>
    %81 = tpu.matmul %79, %80, %cst_49 {dimension_numbers = #tpu.dot_dimension_numbers<[1], [0], [0], [1], [0, 0, 1, 1], [], []>} : vector<1x84xf32>, vector<84x128xf32>, vector<1x128xf32> -> vector<1x128xf32>
    %c0_50 = arith.constant 0 : index
    %c0_51 = arith.constant 0 : index
    %c0_52 = arith.constant 0 : index
    %82 = vector.load %arg9[%c0_50, %c0_51, %c0_52] : memref<1x1x128xf32, #tpu.memory_space<vmem>>, vector<1x1x128xf32>
    %83 = vector.shape_cast %82 : vector<1x1x128xf32> to vector<1x128xf32>
    %84 = vector.shape_cast %81 : vector<1x128xf32> to vector<1x1x128xf32>
    tpu.vector_store %arg9[%c0_50, %c0_51, %c0_52], %84 {strides = array<i32>} : memref<1x1x128xf32, #tpu.memory_space<vmem>>, vector<1x1x128xf32>,
    return
  }
  func.func @transform_0(%arg0: i32) -> (i32, i32, i32) {
    %c0_i32 = arith.constant 0 : i32
    %c0_i32_0 = arith.constant 0 : i32
    %c0_i32_1 = arith.constant 0 : i32
    return %arg0, %c0_i32, %c0_i32_0 : i32, i32, i32
  }
  func.func @transform_1(%arg0: i32) -> (i32, i32) {
    %c0_i32 = arith.constant 0 : i32
    %c0_i32_0 = arith.constant 0 : i32
    %c0_i32_1 = arith.constant 0 : i32
    return %c0_i32, %c0_i32_0 : i32, i32
  }
  func.func @transform_2(%arg0: i32) -> (i32, i32) {
    %c0_i32 = arith.constant 0 : i32
    %c0_i32_0 = arith.constant 0 : i32
    %c0_i32_1 = arith.constant 0 : i32
    return %c0_i32, %c0_i32_0 : i32, i32
  }
  func.func @transform_3(%arg0: i32) -> (i32, i32, i32) {
    %c0_i32 = arith.constant 0 : i32
    %c0_i32_0 = arith.constant 0 : i32
    %c0_i32_1 = arith.constant 0 : i32
    %c0_i32_2 = arith.constant 0 : i32
    return %c0_i32, %c0_i32_0, %c0_i32_1 : i32, i32, i32
  }
  func.func @transform_4(%arg0: i32) -> (i32, i32) {
    %c0_i32 = arith.constant 0 : i32
    %c0_i32_0 = arith.constant 0 : i32
    %c0_i32_1 = arith.constant 0 : i32
    return %c0_i32, %c0_i32_0 : i32, i32
  }
  func.func @transform_5(%arg0: i32) -> (i32, i32, i32) {
    %c0_i32 = arith.constant 0 : i32
    %c0_i32_0 = arith.constant 0 : i32
    %c0_i32_1 = arith.constant 0 : i32
    %c0_i32_2 = arith.constant 0 : i32
    return %c0_i32, %c0_i32_0, %c0_i32_1 : i32, i32, i32
  }
  func.func @transform_6(%arg0: i32) -> (i32, i32) {
    %c0_i32 = arith.constant 0 : i32
    %c0_i32_0 = arith.constant 0 : i32
    %c0_i32_1 = arith.constant 0 : i32
    return %c0_i32, %c0_i32_0 : i32, i32
  }
  func.func @transform_7(%arg0: i32) -> (i32, i32) {
    %c0_i32 = arith.constant 0 : i32
    %c0_i32_0 = arith.constant 0 : i32
    %c0_i32_1 = arith.constant 0 : i32
    return %c0_i32, %c0_i32_0 : i32, i32
  }
  func.func @transform_8(%arg0: i32) -> (i32, i32, i32) {
    %c0_i32 = arith.constant 0 : i32
    %c0_i32_0 = arith.constant 0 : i32
    %c0_i32_1 = arith.constant 0 : i32
    return %arg0, %c0_i32, %c0_i32_0 : i32, i32, i32
  }
}

</mosaic_0001>

<bundles_post_ra>
// kernel: net_forward.1
= control target key start
LH: loop header
LB: loop body
LE: loop exit
PB: predicated region body
PF: predicated region fallthrough
CT: control target
= control target key end

     0   :  { %13 = vsyncpa [#allocation3], 0  ;;  %s2229_s0 = inlined_call_operand.vmem [shape: f32[2,24,420], index: 0, kind: input, shape index: {}]   ;;  %s2230_s1 = inlined_call_operand.vmem [shape: f32[420,144], index: 1, kind: input, shape index: {}]   ;;  %s2231_s2 = inlined_call_operand.vmem [shape: f32[1,144], index: 2, kind: input, shape index: {}]   ;;  %s2232_s3 = inlined_call_operand.vmem [shape: f32[5,72,128], index: 3, kind: input, shape index: {}]   ;;  %s2233_s4 = inlined_call_operand.vmem [shape: f32[1,128], index: 4, kind: input, shape index: {}]   ;;  %s2234_s5 = inlined_call_operand.vmem [shape: f32[4,64,120], index: 5, kind: input, shape index: {}]   ;;  %s2235_s6 = inlined_call_operand.vmem [shape: f32[120,84], index: 6, kind: input, shape index: {}]   ;;  %s2236_s7 = inlined_call_operand.vmem [shape: f32[84,128], index: 7, kind: input, shape index: {}]   ;;  %s2237_s8 = inlined_call_operand.hbm [shape: f32[2,1,128], index: 8, kind: output, shape index: {}]  }
   0x1   :  { %15 = vsyncpa [#allocation3 + $0x1], 0  ;;  %s1409_s27 = smov 0   ;;  %s1411_s28 = smov 0  }
   0x2   :  { %s1413_s29 = smov 0   ;;  %s1415_s30 = smov 0  }
   0x3 LB: > { %s1430_s9 = sadd.s32 4294967295, %s1360_s30   ;;  %s1168_s10 = sadd.s32 4294967294, %s1360_s30   ;;  %s1360_s30 = sphi %s1415_s30, %s2243_s30   ;;  %s1356_s29 = sphi %s1413_s29, %s2242_s29   ;;  %s1352_s28 = sphi %s1411_s28, %s2241_s28   ;;  %s1348_s27 = sphi %s1409_s27, %s2240_s27  }
   0x4   : > { %s1434_s11 = sadd.s32 1, %s1360_s30   ;;  %s201_s12 = sadd.s32 1, %s1356_s29 }
   0x5   : > { %s198_s13 = ssub.s32 %s1360_s30, %s1434_s11  ;;  %p211_p0 = scmp.ne.s32.totalorder %s1356_s29, %s1352_s28 }
   0x6   : > { %p199_p1 = scmp.eq.s32.totalorder %s198_s13, 0  ;;  %p212_p2 = scmp.eq.s32.totalorder %s1430_s9, 1 }
   0x7   : > { %p217_p3 = scmp.ne.s32.totalorder %s1352_s28, %s1348_s27  ;;  %p218_p4 = scmp.eq.s32.totalorder %s1168_s10, 1 }
   0x8   : > { %s1445_s14 = scalar_select %p199_p1, %s1356_s29, %s201_s12  }
   0x9   : > { %p1447_p5 = por %p212_p2, %p211_p0  ;;  %p1451_p6 = por %p218_p4, %p217_p3 }
   0xa   : > { %p1171_p7 = scmp.ge.s32.totalorder %s1360_s30, 1  ;;  %p265_p8 = scmp.lt.s32.totalorder %s1360_s30, 3 }
   0xc   : > { %p266_p9 = pnand %p1171_p7, %p265_p8 }
   0xd   : > { %p298_p10 = scmp.lt.s32.totalorder (!%p266_p9), %s1430_s9, 1  ;;  %s296_s10 = sand.u32 (!%p266_p9), 1, %s1352_s28  }
   0xe   : > { %269 = sbr.rel (%p266_p9) target bundleno = 1043 (0x413), region = 52  ;;  %s1109_s13 = scalar_lea.hbm (!%p266_p9), %s2237_s8, %s1430_s9 }
   0xf   : > { %s297_s17 = scalar_lea.vmem (!%p266_p9), [#allocation2], %s296_s10  ;;  %s1101_s21 = scalar_lea.sflag (!%p266_p9), [#allocation3], %s296_s10 }
  0x10   : > { %s1111_s20 = sshll.u32 (!%p266_p9), %s297_s17, 4  ;;  %s1318_s26 = scalar_lea.hbm (!%p266_p9), %s2237_s8, 2  ;;  %s1112_s20 = int_to_ptr.vmem [resolvable:$true] %s1111_s20 }
  0x13   : > { %v345_v0 = vld [vmem:[%s2230_s1 + $0xf0] sm:$0xff]  ;;  %v343_v2 = vld [vmem:[%s2230_s1 + $0xe0] sm:$0xff]  ;;  %vm437_vm0 = vcmask 1043456   ;;  %s1543_s19 = scalar_select %p298_p10, %s1430_s9, 1  ;;  %v346_v32 = vld [vmem:[%s2230_s1 + $0xf8] sm:$0xff]  ;;  %vm427_vm1 = vcmask 293888  }
  0x14   : > { %v409_v1 = vld [vmem:[%s2230_s1 + $0x2f0] sm:$0xff]  ;;  %444 = vmatpush.msra.mxu0 %v345_v0  ;;  %v407_v4 = vld [vmem:[%s2230_s1 + $0x2e0] sm:$0xff]  ;;  %v344_v36 = vld [vmem:[%s2230_s1 + $0xe8] sm:$0xff]  ;;  %vm676_vm2 = vcmask 457728   ;;  %vm720_vm3 = vcmask 588800   ;;  %vm716_vm4 = vcmask 1046528  }
  0x15   : > { %496 = vmatpush.msra.mxu2 %v409_v1  ;;  %v377_v3 = vld [vmem:[%s2230_s1 + $0x1f0] sm:$0xff]  ;;  %v375_v6 = vld [vmem:[%s2230_s1 + $0x1e0] sm:$0xff]  ;;  %s1255_s24 = smul.u32 96, %s1543_s19  ;;  %v342_v40 = vld [vmem:[%s2230_s1 + $0xd8] sm:$0xff]  ;;  %vm812_vm5 = vcmask 1044480   ;;  %vm775_vm6 = vcmask 1045504  }
  0x16   : > { %470 = vmatpush.msra.mxu1 %v377_v3  ;;  %v341_v5 = vld [vmem:[%s2230_s1 + $0xd0] sm:$0xff]  ;;  %445 = vmatpush.msra.mxu0 %v343_v2  ;;  %v339_v9 = vld [vmem:[%s2230_s1 + $0xc0] sm:$0xff]  ;;  %v340_v44 = vld [vmem:[%s2230_s1 + $0xc8] sm:$0xff]  ;;  %s1363_s19 = smov 64   ;;  %vm909_vm7 = vcmask 523264   ;;  %vm1036_vm8 = vcmask 982016  }
  0x17   : > { %v405_v7 = vld [vmem:[%s2230_s1 + $0x2d0] sm:$0xff]  ;;  %497 = vmatpush.msra.mxu2 %v407_v4  ;;  %v403_v10 = vld [vmem:[%s2230_s1 + $0x2c0] sm:$0xff]  ;;  %s1597_s18 = scalar_lea.vmem %s2229_s0, %s1255_s24  ;;  %v338_v52 = vld [vmem:[%s2230_s1 + $0xb8] sm:$0xff]  ;;  %vm1072_vm9 = vcmask 687104  }
  0x18   : > { %v373_v8 = vld [vmem:[%s2230_s1 + $0x1d0] sm:$0xff]  ;;  %471 = vmatpush.msra.mxu1 %v375_v6  ;;  %446 = vmatpush.msra.mxu0 %v341_v5  ;;  %v371_v11 = vld [vmem:[%s2230_s1 + $0x1c0] sm:$0xff]  ;;  %v1615_v48 = vld [vmem:[%s1597_s18 + $0x18] sm:$0xff] }
  0x19   : > { %498 = vmatpush.msra.mxu2 %v405_v7  ;;  %v337_v12 = vld [vmem:[%s2230_s1 + $0xb0] sm:$0xff]  ;;  %v419_v15 = vld [vmem:[%s2230_s1 + $0x340] sm:$0xf]  ;;  %v336_v56 = vld [vmem:[%s2230_s1 + $0xa8] sm:$0xff] }
  0x1a   : > { %472 = vmatpush.msra.mxu1 %v373_v8  ;;  %v401_v13 = vld [vmem:[%s2230_s1 + $0x2b0] sm:$0xff]  ;;  %447 = vmatpush.msra.mxu0 %v339_v9  ;;  %v335_v16 = vld [vmem:[%s2230_s1 + $0xa0] sm:$0xff]  ;;  %v378_v60 = vld [vmem:[%s2230_s1 + $0x1f8] sm:$0xff] }
  0x1b   : > { %499 = vmatpush.msra.mxu2 %v403_v10  ;;  %v369_v14 = vld [vmem:[%s2230_s1 + $0x1b0] sm:$0xff]  ;;  %v399_v17 = vld [vmem:[%s2230_s1 + $0x2a0] sm:$0xff]  ;;  %1173 = vmatpush.msk.msra.mxu3 %vm437_vm0, %v419_v15  ;;  %v376_v63 = vld [vmem:[%s2230_s1 + $0x1e8] sm:$0xff] }
  0x1c   : > { %473 = vmatpush.msra.mxu1 %v371_v11  ;;  %448 = vmatpush.msra.mxu0 %v337_v12  ;;  %v367_v18 = vld [vmem:[%s2230_s1 + $0x1a0] sm:$0xff]  ;;  %v417_v19 = vld [vmem:[%s2230_s1 + $0x330] sm:$0xff]  ;;  %v410_v0 = vld [vmem:[%s2230_s1 + $0x2f8] sm:$0xff] }
  0x1d   : > { %500 = vmatpush.msra.mxu2 %v401_v13  ;;  %v333_v20 = vld [vmem:[%s2230_s1 + $0x90] sm:$0xff]  ;;  %534 = vmatpush.msra.mxu3 %v417_v19  ;;  %v415_v22 = vld [vmem:[%s2230_s1 + $0x320] sm:$0xff]  ;;  %v1669_v1 = vld [vmem:[%s1597_s18 + $0x8] sm:$0xff] }
  0x1e   : > { %474 = vmatpush.msra.mxu1 %v369_v14  ;;  %v397_v21 = vld [vmem:[%s2230_s1 + $0x290] sm:$0xff]  ;;  %449 = vmatpush.msra.mxu0 %v335_v16  ;;  %v331_v25 = vld [vmem:[%s2230_s1 + $0x80] sm:$0xff]  ;;  %v334_v2 = vld [vmem:[%s2230_s1 + $0x98] sm:$0xff] }
  0x1f   : > { %501 = vmatpush.msra.mxu2 %v399_v17  ;;  %v365_v23 = vld [vmem:[%s2230_s1 + $0x190] sm:$0xff]  ;;  %v395_v26 = vld [vmem:[%s2230_s1 + $0x280] sm:$0xff]  ;;  %535 = vmatpush.msra.mxu3 %v415_v22  ;;  %v374_v3 = vld [vmem:[%s2230_s1 + $0x1d8] sm:$0xff] }
  0x20   : > { %v413_v24 = vld [vmem:[%s2230_s1 + $0x310] sm:$0xff]  ;;  %475 = vmatpush.msra.mxu1 %v367_v18  ;;  %450 = vmatpush.msra.mxu0 %v333_v20  ;;  %v363_v27 = vld [vmem:[%s2230_s1 + $0x180] sm:$0xff]  ;;  %v408_v4 = vld [vmem:[%s2230_s1 + $0x2e8] sm:$0xff] }
  0x21   : > { %502 = vmatpush.msra.mxu2 %v397_v21  ;;  %v411_v28 = vld [vmem:[%s2230_s1 + $0x300] sm:$0xff]  ;;  %v329_v29 = vld [vmem:[%s2230_s1 + $0x70] sm:$0xff]  ;;  %536 = vmatpush.msra.mxu3 %v413_v24  ;;  %v420_v5 = vld [vmem:[%s2230_s1 + $0x348] sm:$0xf] }
  0x22   : > { %476 = vmatpush.msra.mxu1 %v365_v23  ;;  %v393_v30 = vld [vmem:[%s2230_s1 + $0x270] sm:$0xff]  ;;  %451 = vmatpush.msra.mxu0 %v331_v25  ;;  %v327_v33 = vld [vmem:[%s2230_s1 + $0x60] sm:$0xff]  ;;  %v332_v6 = vld [vmem:[%s2230_s1 + $0x88] sm:$0xff] }
  0x23   : > { %503 = vmatpush.msra.mxu2 %v395_v26  ;;  %v361_v31 = vld [vmem:[%s2230_s1 + $0x170] sm:$0xff]  ;;  %v391_v34 = vld [vmem:[%s2230_s1 + $0x260] sm:$0xff]  ;;  %537 = vmatpush.msra.mxu3 %v411_v28  ;;  %v372_v7 = vld [vmem:[%s2230_s1 + $0x1c8] sm:$0xff] }
  0x24   : > { %477 = vmatpush.msra.mxu1 %v363_v27  ;;  %452 = vmatpush.msra.mxu0 %v329_v29  ;;  %v359_v35 = vld [vmem:[%s2230_s1 + $0x160] sm:$0xff]  ;;  %v325_v37 = vld [vmem:[%s2230_s1 + $0x50] sm:$0xff]  ;;  %v406_v8 = vld [vmem:[%s2230_s1 + $0x2d8] sm:$0xff] }
  0x25   : > { %504 = vmatpush.msra.mxu2 %v393_v30  ;;  %v389_v38 = vld [vmem:[%s2230_s1 + $0x250] sm:$0xff]  ;;  %548 = vmatpush.msrb.mxu3 %v346_v32  ;;  %v323_v41 = vld [vmem:[%s2230_s1 + $0x40] sm:$0xff]  ;;  %v1695_v9 = vld [vmem:[%s1597_s18 + $0x38] sm:$0xff] }
  0x26   : > { %478 = vmatpush.msra.mxu1 %v361_v31  ;;  %453 = vmatpush.msra.mxu0 %v327_v33  ;;  %v357_v39 = vld [vmem:[%s2230_s1 + $0x150] sm:$0xff]  ;;  %v387_v42 = vld [vmem:[%s2230_s1 + $0x240] sm:$0xff]  ;;  %v418_v10 = vld [vmem:[%s2230_s1 + $0x338] sm:$0xff] }
  0x27   : > { %505 = vmatpush.msra.mxu2 %v391_v34  ;;  %549 = vmatpush.msrb.mxu3 %v344_v36  ;;  %v355_v43 = vld [vmem:[%s2230_s1 + $0x140] sm:$0xff]  ;;  %v321_v45 = vld [vmem:[%s2230_s1 + $0x30] sm:$0xff]  ;;  %v330_v12 = vld [vmem:[%s2230_s1 + $0x78] sm:$0xff] }
  0x28   : > { %479 = vmatpush.msra.mxu1 %v359_v35  ;;  %454 = vmatpush.msra.mxu0 %v325_v37  ;;  %v385_v46 = vld [vmem:[%s2230_s1 + $0x230] sm:$0xff]  ;;  %v319_v49 = vld [vmem:[%s2230_s1 + $0x20] sm:$0xff]  ;;  %v370_v13 = vld [vmem:[%s2230_s1 + $0x1b8] sm:$0xff] }
  0x29   : > { %506 = vmatpush.msra.mxu2 %v389_v38  ;;  %550 = vmatpush.msrb.mxu3 %v342_v40  ;;  %v353_v47 = vld [vmem:[%s2230_s1 + $0x130] sm:$0xff]  ;;  %v383_v50 = vld [vmem:[%s2230_s1 + $0x220] sm:$0xff]  ;;  %v404_v14 = vld [vmem:[%s2230_s1 + $0x2c8] sm:$0xff] }
  0x2a   : > { %480 = vmatpush.msra.mxu1 %v357_v39  ;;  %455 = vmatpush.msra.mxu0 %v323_v41  ;;  %v351_v51 = vld [vmem:[%s2230_s1 + $0x120] sm:$0xff]  ;;  %v317_v53 = vld [vmem:[%s2230_s1 + $0x10] sm:$0xff]  ;;  %v328_v16 = vld [vmem:[%s2230_s1 + $0x68] sm:$0xff] }
  0x2b   : > { %507 = vmatpush.msra.mxu2 %v387_v42  ;;  %551 = vmatpush.msrb.mxu3 %v340_v44  ;;  %v381_v54 = vld [vmem:[%s2230_s1 + $0x210] sm:$0xff]  ;;  %v315_v57 = vld [vmem:[%s2230_s1] sm:$0xff]  ;;  %v368_v17 = vld [vmem:[%s2230_s1 + $0x1a8] sm:$0xff] }
  0x2c   : > { %481 = vmatpush.msra.mxu1 %v355_v43  ;;  %456 = vmatpush.msra.mxu0 %v321_v45  ;;  %v349_v55 = vld [vmem:[%s2230_s1 + $0x110] sm:$0xff]  ;;  %v379_v58 = vld [vmem:[%s2230_s1 + $0x200] sm:$0xff]  ;;  %v402_v18 = vld [vmem:[%s2230_s1 + $0x2b8] sm:$0xff] }
  0x2d   : > { %508 = vmatpush.msra.mxu2 %v385_v46  ;;  %1174 = vmatmul.msk.f32.vlgmr.msra.gmra.mxu3 %vm427_vm1, %v1615_v48  ;;  %v1650_v59 = vld [vmem:[%s1597_s18 + $0x10] sm:$0xff]  ;;  %v347_v61 = vld [vmem:[%s2230_s1 + $0x100] sm:$0xff]  ;;  %v1729_v19 = vld [vmem:[%s1597_s18 + $0x28] sm:$0xff] }
  0x2e   : > { %482 = vmatpush.msra.mxu1 %v353_v47  ;;  %457 = vmatpush.msra.mxu0 %v319_v49  ;;  %v1659_v62 = vld [vmem:[%s1597_s18] sm:$0xff]  ;;  %v1702_v11 = vld [vmem:[%s1597_s18 + $0x30] sm:$0xff]  ;;  %v326_v20 = vld [vmem:[%s2230_s1 + $0x58] sm:$0xff] }
  0x2f   : > { %509 = vmatpush.msra.mxu2 %v383_v50  ;;  %552 = vmatpush.msrb.mxu3 %v338_v52  ;;  %v1716_v15 = vld [vmem:[%s1597_s18 + $0x20] sm:$0xff]  ;;  %v366_v21 = vld [vmem:[%s2230_s1 + $0x198] sm:$0xff]  ;;  %v400_v22 = vld [vmem:[%s2230_s1 + $0x2a8] sm:$0xff] }
  0x30   : > { %483 = vmatpush.msra.mxu1 %v351_v51  ;;  %458 = vmatpush.msra.mxu0 %v317_v53  ;;  %v324_v23 = vld [vmem:[%s2230_s1 + $0x48] sm:$0xff]  ;;  %v398_v26 = vld [vmem:[%s2230_s1 + $0x298] sm:$0xff]  ;;  %v1758_v28 = vld [vmem:[%s1597_s18 + $0x50] sm:$0xff] }
  0x31   : > { %510 = vmatpush.msra.mxu2 %v381_v54  ;;  %553 = vmatpush.msrb.mxu3 %v336_v56  ;;  %v416_v24 = vld [vmem:[%s2230_s1 + $0x328] sm:$0xff]  ;;  %v1755_v27 = vld [vmem:[%s1597_s18 + $0x58] sm:$0xff]  ;;  %v311_v32 = vld [vmem:[%s1597_s18 + $0x40] sm:$0xff] }
  0x32   : > { %484 = vmatpush.msra.mxu1 %v349_v55  ;;  %459 = vmatpush.msra.mxu0 %v315_v57  ;;  %v364_v25 = vld [vmem:[%s2230_s1 + $0x188] sm:$0xff]  ;;  %v322_v29 = vld [vmem:[%s2230_s1 + $0x38] sm:$0xff]  ;;  %v421_v54 = vld [vmem:[%s2231_s2] sm:$0x3] }
  0x33   : > { %511 = vmatpush.msra.mxu2 %v379_v58  ;;  %460 = vmatmul.f32.vlgmr.msra.gmra.mxu0 %v1659_v62  ;;  %v362_v30 = vld [vmem:[%s2230_s1 + $0x178] sm:$0xff]  ;;  %v396_v31 = vld [vmem:[%s2230_s1 + $0x288] sm:$0xff]  ;;  %v423_v55 = vperm.slane %v421_v54, 0 }
  0x34   : > { %512 = vmatmul.f32.vlgmr.msra.gmra.mxu2 %v1650_v59  ;;  %574 = vmatpush.msrb.mxu0 %v378_v60  ;;  %v320_v33 = vld [vmem:[%s2230_s1 + $0x28] sm:$0xff]  ;;  %v394_v35 = vld [vmem:[%s2230_s1 + $0x278] sm:$0xff] }
  0x35   : > { %485 = vmatpush.msra.mxu1 %v347_v61  ;;  %554 = vmatpush.msrb.mxu3 %v334_v2  ;;  %v360_v34 = vld [vmem:[%s2230_s1 + $0x168] sm:$0xff]  ;;  %v414_v36 = vld [vmem:[%s2230_s1 + $0x318] sm:$0xff] }
  0x36   : > { %575 = vmatpush.msrb.mxu0 %v376_v63  ;;  %486 = vmatmul.f32.vlgmr.msra.gmra.mxu1 %v1669_v1  ;;  %v312_v37 = vld [vmem:[%s1597_s18 + $0x48] sm:$0xff]  ;;  %v318_v38 = vld [vmem:[%s2230_s1 + $0x18] sm:$0xff]  ;;  %s1362_s18 = smov 56  }
  0x37   : > { %600 = vmatpush.msrb.mxu1 %v410_v0  ;;  %1177 = vmatpush.msk.msrb.mxu2 %vm437_vm0, %v420_v5  ;;  %v358_v39 = vld [vmem:[%s2230_s1 + $0x158] sm:$0xff]  ;;  %v392_v40 = vld [vmem:[%s2230_s1 + $0x268] sm:$0xff] }
  0x38   : > { %576 = vmatpush.msrb.mxu0 %v374_v3  ;;  %555 = vmatpush.msrb.mxu3 %v332_v6  ;;  %v316_v41 = vld [vmem:[%s2230_s1 + $0x8] sm:$0xff]  ;;  %v390_v44 = vld [vmem:[%s2230_s1 + $0x258] sm:$0xff] }
  0x39   : > { %601 = vmatpush.msrb.mxu1 %v408_v4  ;;  %1175 = vmatmul.msk.f32.gmra.mxu3 %vm427_vm1, %v1695_v9  ;;  %v412_v42 = vld [vmem:[%s2230_s1 + $0x308] sm:$0xff]  ;;  %v354_v45 = vld [vmem:[%s2230_s1 + $0x138] sm:$0xff] }
  0x3a   : > { %577 = vmatpush.msrb.mxu0 %v372_v7  ;;  %638 = vmatpush.msrb.mxu2 %v418_v10  ;;  %v356_v43 = vld [vmem:[%s2230_s1 + $0x148] sm:$0xff]  ;;  %v386_v49 = vld [vmem:[%s2230_s1 + $0x238] sm:$0xff] }
  0x3b   : > { %602 = vmatpush.msrb.mxu1 %v406_v8  ;;  %556 = vmatpush.msrb.mxu3 %v330_v12  ;;  %v388_v46 = vld [vmem:[%s2230_s1 + $0x248] sm:$0xff]  ;;  %v350_v50 = vld [vmem:[%s2230_s1 + $0x118] sm:$0xff] }
  0x3c   : > { %515 = vmatmul.f32.gmra.mxu2 %v1702_v11  ;;  %578 = vmatpush.msrb.mxu0 %v370_v13  ;;  %v352_v47 = vld [vmem:[%s2230_s1 + $0x128] sm:$0xff] }
  0x3d   : > { %603 = vmatpush.msrb.mxu1 %v404_v14  ;;  %463 = vmatmul.f32.gmra.mxu0 %v1716_v15  ;;  %v384_v51 = vld [vmem:[%s2230_s1 + $0x228] sm:$0xff] }
  0x3e   : > { %557 = vmatpush.msrb.mxu3 %v328_v16  ;;  %579 = vmatpush.msrb.mxu0 %v368_v17  ;;  %v348_v52 = vld [vmem:[%s2230_s1 + $0x108] sm:$0xff] }
  0x3f   : > { %604 = vmatpush.msrb.mxu1 %v402_v18  ;;  %639 = vmatpush.msrb.mxu2 %v416_v24  ;;  %v380_v53 = vld [vmem:[%s2230_s1 + $0x208] sm:$0xff]  ;;  %v424_v18 = vperm.slane %v421_v54, 1  ;;  %v1210_v54 = vld [vmem:[%s2232_s3 + $0x118] sm:$0xff] }
  0x40   : > { %489 = vmatmul.f32.gmra.mxu1 %v1729_v19  ;;  %558 = vmatpush.msrb.mxu3 %v326_v20 }
  0x41   : > { %580 = vmatpush.msrb.mxu0 %v366_v21  ;;  %605 = vmatpush.msrb.mxu1 %v400_v22 }
  0x42   : > { %559 = vmatpush.msrb.mxu3 %v324_v23  ;;  %640 = vmatpush.msrb.mxu2 %v414_v36 }
  0x43   : > { %581 = vmatpush.msrb.mxu0 %v364_v25  ;;  %606 = vmatpush.msrb.mxu1 %v398_v26 }
  0x44   : > { %1176 = vmatmul.msk.f32.gmra.mxu3 %vm427_vm1, %v1755_v27  ;;  %518 = vmatmul.f32.gmra.mxu2 %v1758_v28 }
  0x45   : > { %560 = vmatpush.msrb.mxu3 %v322_v29  ;;  %582 = vmatpush.msrb.mxu0 %v362_v30 }
  0x46   : > { %607 = vmatpush.msrb.mxu1 %v396_v31  ;;  %466 = vmatmul.f32.gmra.mxu0 %v311_v32 }
  0x47   : > { %561 = vmatpush.msrb.mxu3 %v320_v33  ;;  %583 = vmatpush.msrb.mxu0 %v360_v34 }
  0x48   : > { %608 = vmatpush.msrb.mxu1 %v394_v35  ;;  %641 = vmatpush.msrb.mxu2 %v412_v42 }
  0x49   : > { %492 = vmatmul.f32.gmra.mxu1 %v312_v37  ;;  %562 = vmatpush.msrb.mxu3 %v318_v38 }
  0x4a   : > { %584 = vmatpush.msrb.mxu0 %v358_v39  ;;  %609 = vmatpush.msrb.mxu1 %v392_v40 }
  0x4b   : > { %563 = vmatpush.msrb.mxu3 %v316_v41 }
  0x4c   : > { %585 = vmatpush.msrb.mxu0 %v356_v43  ;;  %610 = vmatpush.msrb.mxu1 %v390_v44 }
  0x4d   : > { %564 = vmatmul.f32.vlgmr.msrb.gmra.mxu3 %v1659_v62  ;;  %1178 = vmatmul.msk.f32.vlgmr.msrb.gmra.mxu2 %vm427_vm1, %v1615_v48  ;;  %v382_v48 = vld [vmem:[%s2230_s1 + $0x218] sm:$0xff] }
  0x4e   : > { %586 = vmatpush.msrb.mxu0 %v354_v45  ;;  %611 = vmatpush.msrb.mxu1 %v388_v46 }
  0x50   : > { %587 = vmatpush.msrb.mxu0 %v352_v47  ;;  %612 = vmatpush.msrb.mxu1 %v386_v49  ;;  %v1189_v47 = vld [vmem:[%s2232_s3 + $0x88] sm:$0xff]  ;;  %v1188_v49 = vld [vmem:[%s2232_s3 + $0x80] sm:$0xff] }
  0x51   : > { %730 = vmatpush.msra.mxu3 %v1189_v47 }
  0x52   : > { %588 = vmatpush.msrb.mxu0 %v350_v50  ;;  %613 = vmatpush.msrb.mxu1 %v384_v51  ;;  %v703_v50 = vld [vmem:[%s2232_s3 + $0x40] sm:$0xff]  ;;  %v1187_v51 = vld [vmem:[%s2232_s3 + $0x78] sm:$0xff] }
  0x53   : > { %752 = vmatpush.msra.mxu2 %v703_v50  ;;  %731 = vmatpush.msra.mxu3 %v1188_v49 }
  0x54   : > { %589 = vmatpush.msrb.mxu0 %v348_v52  ;;  %614 = vmatpush.msrb.mxu1 %v382_v48  ;;  %v1186_v52 = vld [vmem:[%s2232_s3 + $0x70] sm:$0xff]  ;;  %v1185_v48 = vld [vmem:[%s2232_s3 + $0x68] sm:$0xff] }
  0x55   : > { %567 = vmatmul.f32.gmra.mxu3 %v1716_v15  ;;  %590 = vmatmul.f32.vlgmr.msrb.gmra.mxu0 %v1669_v1 }
  0x56   : > { %615 = vmatpush.msrb.mxu1 %v380_v53  ;;  %1179 = vmatmul.msk.f32.gmra.mxu2 %vm427_vm1, %v1695_v9  ;;  %v702_v53 = vld [vmem:[%s2232_s3 + $0x38] sm:$0xff] }
  0x57   : > { %616 = vmatmul.f32.vlgmr.msrb.gmra.mxu1 %v1650_v59  ;;  %732 = vmatpush.msra.mxu3 %v1187_v51 }
  0x58   : > { %753 = vmatpush.msra.mxu2 %v702_v53  ;;  %825 = vmatpush.msra.mxu0 %v1210_v54 }
  0x59   : > { %733 = vmatpush.msra.mxu3 %v1186_v52 }
  0x5b   : > { %734 = vmatpush.msra.mxu3 %v1185_v48 }
  0x5d   : > { %570 = vmatmul.f32.gmra.mxu3 %v311_v32  ;;  %593 = vmatmul.f32.gmra.mxu0 %v1729_v19 }
  0x5e   : > { %1180 = vmatmul.msk.f32.gmra.mxu2 %vm427_vm1, %v1755_v27 }
  0x5f   : > { %619 = vmatmul.f32.gmra.mxu1 %v1702_v11 }
  0x65   : > { %596 = vmatmul.f32.gmra.mxu0 %v312_v37 }
  0x67   : > { %622 = vmatmul.f32.gmra.mxu1 %v1758_v28 }
  0xb0   : > { %v461_v56 = vpop.f32.mrf.mxu0  ;;  %v539_v59 = vpop.f32.mrf.mxu3 }
  0xb1   : > { %v462_v57 = vadd.f32 %v461_v56, %v423_v55  ;;  %v1184_v56 = vld [vmem:[%s2232_s3 + $0x60] sm:$0xff] }
  0xb2   : > { %735 = vmatpush.msra.mxu3 %v1184_v56 }
  0xb3   : > { %v487_v58 = vpop.f32.mrf.mxu1 }
  0xb4   : > { %v488_v60 = vadd.f32 %v487_v58, %v462_v57  ;;  %v701_v57 = vld [vmem:[%s2232_s3 + $0x30] sm:$0xff] }
  0xb5   : > { %754 = vmatpush.msra.mxu2 %v701_v57  ;;  %v1209_v58 = vld [vmem:[%s2232_s3 + $0x110] sm:$0xff]  ;;  %v897_v57 = vld [vmem:[%s2234_s5 + $0x38] sm:$0xff] }
  0xb6   : > { %826 = vmatpush.msra.mxu0 %v1209_v58  ;;  %v1229_v58 = vld [vmem:[%s2234_s5 + $0x78] sm:$0xff] }
  0xb7   : > { %v513_v61 = vpop.f32.mrf.mxu2 }
  0xb8   : > { %v514_v62 = vadd.f32 %v513_v61, %v488_v60  ;;  %v1183_v60 = vld [vmem:[%s2232_s3 + $0x58] sm:$0xff]  ;;  %v700_v61 = vld [vmem:[%s2232_s3 + $0x28] sm:$0xff] }
  0xb9   : > { %736 = vmatpush.msra.mxu3 %v1183_v60  ;;  %755 = vmatpush.msra.mxu2 %v700_v61  ;;  %v1228_v60 = vld [vmem:[%s2234_s5 + $0x70] sm:$0xff]  ;;  %v895_v61 = vld [vmem:[%s2234_s5 + $0x28] sm:$0xff] }
  0xba   : > { %v1850_v63 = vadd.f32 %v539_v59, %v514_v62  ;;  %v464_v0 = vpop.f32.mrf.mxu0  ;;  %v1219_v59 = vld [vmem:[%s2232_s3 + $0x158] sm:$0xff]  ;;  %v1208_v62 = vld [vmem:[%s2232_s3 + $0x108] sm:$0xff] }
  0xbb   : > { %v465_v1 = vadd.f32 %v464_v0, %v423_v55  ;;  %v1218_v0 = vld [vmem:[%s2232_s3 + $0x150] sm:$0xff]  ;;  %827 = vmatpush.msra.mxu0 %v1208_v62  ;;  %v1227_v62 = vld [vmem:[%s2234_s5 + $0x68] sm:$0xff] }
  0xbc   : > { %v652_v2 = vmax.f32 %v1850_v63, 0.0  ;;  %v542_v5 = vpop.f32.mrf.mxu3 }
  0xbd   : > { %v490_v3 = vpop.f32.mrf.mxu1 }
  0xbe   : > { %v491_v4 = vadd.f32 %v490_v3, %v465_v1  ;;  %664 = vrot.lane.b32.xlu2 %v652_v2, %s1362_s18  ;;  %v1182_v1 = vld [vmem:[%s2232_s3 + $0x50] sm:$0xff]  ;;  %v699_v3 = vld [vmem:[%s2232_s3 + $0x20] sm:$0xff] }
  0xbf   : > { %v516_v6 = vpop.f32.mrf.mxu2  ;;  %737 = vmatpush.msra.mxu3 %v1182_v1  ;;  %756 = vmatpush.msra.mxu2 %v699_v3  ;;  %v1226_v1 = vld [vmem:[%s2234_s5 + $0x60] sm:$0xff]  ;;  %v893_v3 = vld [vmem:[%s2234_s5 + $0x18] sm:$0xff] }
  0xc0   : > { %v517_v7 = vadd.f32 %v516_v6, %v491_v4  ;;  %v1207_v4 = vld [vmem:[%s2232_s3 + $0x100] sm:$0xff]  ;;  %v1181_v6 = vld [vmem:[%s2232_s3 + $0x48] sm:$0xff] }
  0xc1   : > { %828 = vmatpush.msra.mxu0 %v1207_v4  ;;  %738 = vmatpush.msra.mxu3 %v1181_v6  ;;  %v1225_v4 = vld [vmem:[%s2234_s5 + $0x58] sm:$0xff]  ;;  %v1224_v6 = vld [vmem:[%s2234_s5 + $0x50] sm:$0xff] }
  0xc2   : > { %v1856_v8 = vadd.f32 %v542_v5, %v517_v7  ;;  %v1217_v5 = vld [vmem:[%s2232_s3 + $0x148] sm:$0xff]  ;;  %v698_v7 = vld [vmem:[%s2232_s3 + $0x18] sm:$0xff] }
  0xc3   : > { %v467_v9 = vpop.f32.mrf.mxu0  ;;  %757 = vmatpush.msra.mxu2 %v698_v7  ;;  %v891_v7 = vld [vmem:[%s2234_s5 + $0x8] sm:$0xff] }
  0xc4   : > { %v468_v10 = vadd.f32 %v467_v9, %v423_v55  ;;  %v654_v11 = vmax.f32 %v1856_v8, 0.0  ;;  %v1220_v55 = vld [vmem:[%s2232_s3 + $0x160] sm:$0xff]  ;;  %v1200_v9 = vld [vmem:[%s2232_s3 + $0xd0] sm:$0xff] }
  0xc5   : > { %861 = vmatpush.msra.mxu1 %v1220_v55  ;;  %788 = vmatpush.msrb.mxu3 %v1200_v9  ;;  %v1223_v9 = vld [vmem:[%s2234_s5 + $0x48] sm:$0xff] }
  0xc6   : > { %v493_v12 = vpop.f32.mrf.mxu1  ;;  %668 = vrot.lane.b32.xlu0 %v654_v11, %s1362_s18 }
  0xc7   : > { %v494_v13 = vadd.f32 %v493_v12, %v468_v10  ;;  %v545_v14 = vpop.f32.mrf.mxu3  ;;  %v519_v15 = vpop.f32.mrf.mxu2  ;;  %862 = vmatpush.msra.mxu1 %v1219_v59  ;;  %v1206_v10 = vld [vmem:[%s2232_s3 + $0xf8] sm:$0xff]  ;;  %v1216_v12 = vld [vmem:[%s2232_s3 + $0x140] sm:$0xff]  ;;  %v896_v59 = vld [vmem:[%s2234_s5 + $0x30] sm:$0xff] }
  0xc8   : > { %829 = vmatpush.msra.mxu0 %v1206_v10  ;;  %v890_v10 = vld [vmem:[%s2234_s5] sm:$0xff] }
  0xc9   : > { %v520_v16 = vadd.f32 %v519_v15, %v494_v13  ;;  %863 = vmatpush.msra.mxu1 %v1218_v0  ;;  %v697_v13 = vld [vmem:[%s2232_s3 + $0x10] sm:$0xff]  ;;  %v894_v0 = vld [vmem:[%s2234_s5 + $0x20] sm:$0xff] }
  0xca   : > { %758 = vmatpush.msra.mxu2 %v697_v13  ;;  %v1205_v15 = vld [vmem:[%s2232_s3 + $0xf0] sm:$0xff]  ;;  %v1248_v13 = vld [vmem:[%s2234_s5 + $0xf8] sm:$0xff] }
  0xcb   : > { %v1862_v17 = vadd.f32 %v545_v14, %v520_v16  ;;  %864 = vmatpush.msra.mxu1 %v1217_v5  ;;  %v1199_v14 = vld [vmem:[%s2232_s3 + $0xc8] sm:$0xff]  ;;  %v1215_v16 = vld [vmem:[%s2232_s3 + $0x138] sm:$0xff]  ;;  %830 = vmatpush.msra.mxu0 %v1205_v15  ;;  %v892_v5 = vld [vmem:[%s2234_s5 + $0x10] sm:$0xff] }
  0xcc   : > { %789 = vmatpush.msrb.mxu3 %v1199_v14 }
  0xcd   : > { %v656_v19 = vmax.f32 %v1862_v17, 0.0  ;;  %865 = vmatpush.msra.mxu1 %v1216_v12 }
  0xcf   : > { %672 = vrot.lane.b32.xlu1 %v656_v19, %s1362_s18  ;;  %866 = vmatpush.msra.mxu1 %v1215_v16 }
  0xd0   : > { %v565_v20 = vpop.f32.mrf.mxu3  ;;  %v643_v21 = vpop.f32.mrf.mxu2 }
  0xd1   : > { %v566_v22 = vadd.f32 %v565_v20, %v424_v18  ;;  %v1198_v20 = vld [vmem:[%s2232_s3 + $0xc0] sm:$0xff] }
  0xd2   : > { %v591_v23 = vpop.f32.mrf.mxu0  ;;  %790 = vmatpush.msrb.mxu3 %v1198_v20 }
  0xd3   : > { %v592_v24 = vadd.f32 %v591_v23, %v566_v22  ;;  %v1214_v22 = vld [vmem:[%s2232_s3 + $0x130] sm:$0xff]  ;;  %v695_v23 = vld [vmem:[%s2232_s3] sm:$0xff] }
  0xd4   : > { %v617_v25 = vpop.f32.mrf.mxu1  ;;  %867 = vmatpush.msra.mxu1 %v1214_v22  ;;  %v1297_v22 = vld [vmem:[%s2233_s4] ss:$0 sm:$0xff] }
  0xd5   : > { %v618_v26 = vadd.f32 %v617_v25, %v592_v24  ;;  %v1197_v24 = vld [vmem:[%s2232_s3 + $0xb8] sm:$0xff]  ;;  %v1203_v25 = vld [vmem:[%s2232_s3 + $0xe0] sm:$0xff] }
  0xd6   : > { %791 = vmatpush.msrb.mxu3 %v1197_v24 }
  0xd7   : > { %v644_v27 = vadd.f32 %v643_v21, %v618_v26  ;;  %v1204_v21 = vld [vmem:[%s2232_s3 + $0xe8] sm:$0xff] }
  0xd8   : > { %v568_v28 = vpop.f32.mrf.mxu3  ;;  %831 = vmatpush.msra.mxu0 %v1204_v21  ;;  %v1213_v26 = vld [vmem:[%s2232_s3 + $0x128] sm:$0xff] }
  0xd9   : > { %v653_v29 = vmax.f32 %v644_v27, 0.0  ;;  %v569_v30 = vadd.f32 %v568_v28, %v424_v18  ;;  %v646_v32 = vpop.f32.mrf.mxu2  ;;  %v1196_v27 = vld [vmem:[%s2232_s3 + $0xb0] sm:$0xff]  ;;  %v1202_v28 = vld [vmem:[%s2232_s3 + $0xd8] sm:$0xff]  ;;  %868 = vmatpush.msra.mxu1 %v1213_v26 }
  0xda   : > { %v594_v31 = vpop.f32.mrf.mxu0  ;;  %832 = vmatpush.msra.mxu0 %v1203_v25  ;;  %792 = vmatpush.msrb.mxu3 %v1196_v27  ;;  %v1222_v27 = vld [vmem:[%s2234_s5 + $0x40] sm:$0xff] }
  0xdb   : > { %v595_v33 = vadd.f32 %v594_v31, %v569_v30  ;;  %666 = vrot.lane.b32.xlu2 %v653_v29, %s1362_s18  ;;  %v1212_v29 = vld [vmem:[%s2232_s3 + $0x120] sm:$0xff]  ;;  %v1195_v30 = vld [vmem:[%s2232_s3 + $0xa8] sm:$0xff] }
  0xdc   : > { %v620_v34 = vpop.f32.mrf.mxu1  ;;  %833 = vmatpush.msra.mxu0 %v1202_v28  ;;  %869 = vmatpush.msra.mxu1 %v1212_v29  ;;  %v1194_v31 = vld [vmem:[%s2232_s3 + $0xa0] sm:$0xff]  ;;  %v1239_v28 = vld [vmem:[%s2234_s5 + $0xb8] sm:$0xff]  ;;  %v1247_v29 = vld [vmem:[%s2234_s5 + $0xf0] sm:$0xff] }
  0xdd   : > { %v621_v35 = vadd.f32 %v620_v34, %v595_v33  ;;  %793 = vmatpush.msrb.mxu3 %v1195_v30  ;;  %v1192_v33 = vld [vmem:[%s2232_s3 + $0x90] sm:$0xff] }
  0xde   : > { %942 = vmatpush.msrb.mxu1 %v897_v57  ;;  %920 = vmatpush.msrb.mxu0 %v1229_v58  ;;  %v1238_v30 = vld [vmem:[%s2234_s5 + $0xb0] sm:$0xff]  ;;  %v1022_v57 = vld [vmem:[%s2235_s6 + $0x8] sm:$0xff]  ;;  %v1021_v58 = vld [vmem:[%s2235_s6] sm:$0xff] }
  0xdf   : > { %v647_v36 = vadd.f32 %v646_v32, %v621_v35  ;;  %v1193_v32 = vld [vmem:[%s2232_s3 + $0x98] sm:$0xff]  ;;  %794 = vmatpush.msrb.mxu3 %v1194_v31  ;;  %v1246_v31 = vld [vmem:[%s2234_s5 + $0xe8] sm:$0xff] }
  0xe0   : > { %v571_v37 = vpop.f32.mrf.mxu3  ;;  %943 = vmatpush.msrb.mxu1 %v896_v59  ;;  %921 = vmatpush.msrb.mxu0 %v1228_v60  ;;  %v1071_v59 = vld [vmem:[%s2236_s7 + $0x50] sm:$0xf]  ;;  %v1070_v60 = vld [vmem:[%s2236_s7 + $0x48] sm:$0xff] }
  0xe1   : > { %v655_v38 = vmax.f32 %v647_v36, 0.0  ;;  %v572_v39 = vadd.f32 %v571_v37, %v424_v18  ;;  %v649_v43 = vpop.f32.mrf.mxu2  ;;  %v696_v18 = vld [vmem:[%s2232_s3 + $0x8] sm:$0xff]  ;;  %795 = vmatpush.msrb.mxu3 %v1193_v32 }
  0xe2   : > { %v597_v40 = vpop.f32.mrf.mxu0  ;;  %759 = vmatpush.msra.mxu2 %v696_v18  ;;  %944 = vmatpush.msrb.mxu1 %v895_v61  ;;  %v1237_v32 = vld [vmem:[%s2234_s5 + $0xa8] sm:$0xff]  ;;  %v1069_v61 = vld [vmem:[%s2236_s7 + $0x40] sm:$0xff] }
  0xe3   : > { %v598_v41 = vadd.f32 %v597_v40, %v572_v39  ;;  %670 = vrot.lane.b32.xlu0 %v655_v38, %s1362_s18  ;;  %796 = vmatpush.msrb.mxu3 %v1192_v33  ;;  %v1245_v33 = vld [vmem:[%s2234_s5 + $0xe0] sm:$0xff] }
  0xe4   : > { %v623_v42 = vpop.f32.mrf.mxu1  ;;  %760 = vmatpush.msra.mxu2 %v695_v23  ;;  %922 = vmatpush.msrb.mxu0 %v1227_v62  ;;  %v1068_v62 = vld [vmem:[%s2236_s7 + $0x38] sm:$0xff] }
  0xe5   : > { %v624_v44 = vadd.f32 %v623_v42, %v598_v41  ;;  %945 = vmatpush.msrb.mxu1 %v894_v0  ;;  %v1067_v0 = vld [vmem:[%s2236_s7 + $0x30] sm:$0xff] }
  0xe6   : > { %923 = vmatpush.msrb.mxu0 %v1226_v1  ;;  %v1066_v1 = vld [vmem:[%s2236_s7 + $0x28] sm:$0xff] }
  0xe7   : > { %v650_v45 = vadd.f32 %v649_v43, %v624_v44  ;;  %946 = vmatpush.msrb.mxu1 %v893_v3  ;;  %v1065_v3 = vld [vmem:[%s2236_s7 + $0x20] sm:$0xff] }
  0xe8   : > { %924 = vmatpush.msrb.mxu0 %v1225_v4  ;;  %v1064_v4 = vld [vmem:[%s2236_s7 + $0x18] sm:$0xff] }
  0xe9   : > { %v657_v46 = vmax.f32 %v650_v45, 0.0  ;;  %947 = vmatpush.msrb.mxu1 %v892_v5  ;;  %v1063_v5 = vld [vmem:[%s2236_s7 + $0x10] sm:$0xff] }
  0xea   : > { %925 = vmatpush.msrb.mxu0 %v1224_v6 }
  0xeb   : > { %674 = vrot.lane.b32.xlu1 %v657_v46, %s1362_s18  ;;  %948 = vmatpush.msrb.mxu1 %v891_v7 }
  0xec   : > { %926 = vmatpush.msrb.mxu0 %v1223_v9 }
  0xed   : > { %949 = vmatpush.msrb.mxu1 %v890_v10 }
  0xee   : > { %927 = vmatpush.msrb.mxu0 %v1222_v27 }
 0x118   : > { %v665_v35 = vpop.permute.xlu2 %664 }
 0x135   : > { %v667_v39 = vpop.permute.xlu2 %666 }
 0x136   : > { %v677_v43 = vsel %vm676_vm2, %v665_v35, %v667_v39  ;;  %v1244_v35 = vld [vmem:[%s2234_s5 + $0xd8] sm:$0xff]  ;;  %v1242_v39 = vld [vmem:[%s2234_s5 + $0xc8] sm:$0xff] }
 0x137   : > { %v683_v47 = vmax.f32 %v652_v2, %v677_v43  ;;  %v1035_v43 = vld [vmem:[%s2235_s6 + $0x70] sm:$0xff] }
 0x138   : > { %v669_v34 = vpop.permute.xlu0 %668  ;;  %1041 = vmatpush.msrb.mxu2 %v1035_v43 }
 0x141   : > { %v673_v36 = vpop.permute.xlu1 %672 }
 0x155   : > { %v671_v37 = vpop.permute.xlu0 %670 }
 0x156   : > { %v678_v38 = vsel %vm676_vm2, %v669_v34, %v671_v37  ;;  %v1236_v34 = vld [vmem:[%s2234_s5 + $0xa0] sm:$0xff]  ;;  %v1243_v37 = vld [vmem:[%s2234_s5 + $0xd0] sm:$0xff] }
 0x157   : > { %v684_v40 = vmax.f32 %v654_v11, %v678_v38  ;;  %v1234_v38 = vld [vmem:[%s2234_s5 + $0x90] sm:$0xff] }
 0x159   : > { %v688_v45 = vrot.slane %v684_v40, 4 }
 0x15d   : > { %v675_v41 = vpop.permute.xlu1 %674 }
 0x15e   : > { %v679_v42 = vsel %vm676_vm2, %v673_v36, %v675_v41  ;;  %v1235_v36 = vld [vmem:[%s2234_s5 + $0x98] sm:$0xff]  ;;  %v1241_v41 = vld [vmem:[%s2234_s5 + $0xc0] sm:$0xff] }
 0x15f   : > { %v685_v44 = vmax.f32 %v656_v19, %v679_v42  ;;  %v1232_v42 = vld [vmem:[%s2234_s5 + $0x80] sm:$0xff] }
 0x161   : > { %v689_v46 = vrot.slane %v685_v44, 4  ;;  %v1034_v44 = vld [vmem:[%s2235_s6 + $0x68] sm:$0xff] }
 0x162   : > { %1042 = vmatpush.msrb.mxu2 %v1034_v44 }
 0x163   : > { %v690_v49 = vsel %vm437_vm0, %v688_v45, %v689_v46  ;;  %v694_v50 = vmax.f32 %v684_v40, %v689_v46  ;;  %v1233_v40 = vld [vmem:[%s2234_s5 + $0x88] sm:$0xff]  ;;  %v1033_v45 = vld [vmem:[%s2235_s6 + $0x60] sm:$0xff]  ;;  %v1032_v46 = vld [vmem:[%s2235_s6 + $0x58] sm:$0xff] }
 0x164   : > { %v693_v51 = vmax.f32 %v683_v47, %v690_v49  ;;  %1043 = vmatpush.msrb.mxu2 %v1033_v45  ;;  %v1031_v47 = vld [vmem:[%s2235_s6 + $0x50] sm:$0xff]  ;;  %v1030_v49 = vld [vmem:[%s2235_s6 + $0x48] sm:$0xff] }
 0x165   : > { %v718_v52 = vrot.slane %v694_v50, 1  ;;  %v814_v8 = vrot.slane %v694_v50, 3  ;;  %v850_v11 = vrot.slane %v694_v50, 4  ;;  %v777_v55 = vrot.slane %v694_v50, 2 }
 0x166   : > { %1191 = vmatmul.msk.f32.vlgmr.msra.gmra.mxu2 %vm720_vm3, %v693_v51  ;;  %v717_v48 = vrot.slane %v693_v51, 1  ;;  %v813_v17 = vrot.slane %v693_v51, 3  ;;  %v849_v19 = vrot.slane %v693_v51, 4  ;;  %v776_v2 = vrot.slane %v693_v51, 2 }
 0x167   : > { %1044 = vmatpush.msrb.mxu2 %v1032_v46 }
 0x168   : > { %v719_v53 = vsel %vm716_vm4, %v717_v48, %v718_v52  ;;  %v815_v54 = vsel %vm812_vm5, %v813_v17, %v814_v8  ;;  %v851_v63 = vsel %vm437_vm0, %v849_v19, %v850_v11  ;;  %v778_v56 = vsel %vm775_vm6, %v776_v2, %v777_v55  ;;  %v1029_v19 = vld [vmem:[%s2235_s6 + $0x40] sm:$0xff]  ;;  %v1024_v55 = vld [vmem:[%s2235_s6 + $0x18] sm:$0xff] }
 0x169   : > { %1190 = vmatmul.msk.f32.vlgmr.msra.gmra.mxu3 %vm720_vm3, %v719_v53  ;;  %1211 = vmatmul.msk.f32.vlgmr.msra.gmra.mxu0 %vm720_vm3, %v815_v54  ;;  %v1028_v53 = vld [vmem:[%s2235_s6 + $0x38] sm:$0xff]  ;;  %v1027_v54 = vld [vmem:[%s2235_s6 + $0x30] sm:$0xff]  ;;  %v1025_v2 = vld [vmem:[%s2235_s6 + $0x20] sm:$0xff] }
 0x16a   : > { %1221 = vmatmul.msk.f32.vlgmr.msra.gmra.mxu1 %vm720_vm3, %v851_v63  ;;  %974 = vmatpush.msra.mxu0 %v1239_v28  ;;  %v1026_v63 = vld [vmem:[%s2235_s6 + $0x28] sm:$0xff] }
 0x16b   : > { %1007 = vmatpush.msra.mxu1 %v1248_v13  ;;  %1045 = vmatpush.msrb.mxu2 %v1031_v47 }
 0x16c   : > { %975 = vmatpush.msra.mxu0 %v1238_v30  ;;  %1251 = vmatpush.msk.msra.mxu3 %vm437_vm0, %v1071_v59 }
 0x16d   : > { %1008 = vmatpush.msra.mxu1 %v1247_v29  ;;  %1046 = vmatpush.msrb.mxu2 %v1030_v49 }
 0x16e   : > { %976 = vmatpush.msra.mxu0 %v1237_v32  ;;  %1085 = vmatpush.msra.mxu3 %v1070_v60 }
 0x16f   : > { %1009 = vmatpush.msra.mxu1 %v1246_v31  ;;  %1047 = vmatpush.msrb.mxu2 %v1029_v19 }
 0x170   : > { %977 = vmatpush.msra.mxu0 %v1236_v34  ;;  %1086 = vmatpush.msra.mxu3 %v1069_v61 }
 0x171   : > { %1201 = vmatmul.msk.f32.vlgmr.msrb.gmra.mxu3 %vm720_vm3, %v778_v56  ;;  %1010 = vmatpush.msra.mxu1 %v1245_v33  ;;  %v1023_v56 = vld [vmem:[%s2235_s6 + $0x10] sm:$0xff] }
 0x172   : > { %978 = vmatpush.msra.mxu0 %v1235_v36  ;;  %1048 = vmatpush.msrb.mxu2 %v1028_v53 }
 0x173   : > { %1011 = vmatpush.msra.mxu1 %v1244_v35  ;;  %1087 = vmatpush.msra.mxu3 %v1068_v62 }
 0x174   : > { %979 = vmatpush.msra.mxu0 %v1234_v38  ;;  %1049 = vmatpush.msrb.mxu2 %v1027_v54 }
 0x175   : > { %1012 = vmatpush.msra.mxu1 %v1243_v37  ;;  %1088 = vmatpush.msra.mxu3 %v1067_v0 }
 0x176   : > { %980 = vmatpush.msra.mxu0 %v1233_v40  ;;  %1050 = vmatpush.msrb.mxu2 %v1026_v63 }
 0x177   : > { %1013 = vmatpush.msra.mxu1 %v1242_v39  ;;  %1089 = vmatpush.msra.mxu3 %v1066_v1 }
 0x178   : > { %981 = vmatpush.msra.mxu0 %v1232_v42  ;;  %1051 = vmatpush.msrb.mxu2 %v1025_v2 }
 0x179   : > { %1014 = vmatpush.msra.mxu1 %v1241_v41  ;;  %1090 = vmatpush.msra.mxu3 %v1065_v3 }
 0x17a   : > { %1052 = vmatpush.msrb.mxu2 %v1024_v55 }
 0x17b   : > { %1091 = vmatpush.msra.mxu3 %v1064_v4 }
 0x17c   : > { %1053 = vmatpush.msrb.mxu2 %v1023_v56 }
 0x17d   : > { %1092 = vmatpush.msra.mxu3 %v1063_v5 }
 0x17e   : > { %1054 = vmatpush.msrb.mxu2 %v1022_v57 }
 0x180   : > { %1055 = vmatpush.msrb.mxu2 %v1021_v58 }
 0x1e6   : > { %v835_v20 = vpop.f32.mrf.mxu0 }
 0x1e7   : > { %v871_v23 = vpop.f32.mrf.mxu1 }
 0x1e9   : > { %v762_v14 = vpop.f32.mrf.mxu2 }
 0x1ec   : > { %v740_v12 = vpop.f32.mrf.mxu3 }
 0x1ed   : > { %v763_v15 = vadd.f32 %v762_v14, %v740_v12 }
 0x1f4   : > { %v798_v16 = vpop.f32.mrf.mxu3 }
 0x1f5   : > { %v801_v18 = vadd.f32 %v798_v16, %v763_v15  ;;  %v1062_v16 = vld [vmem:[%s2236_s7 + $0x8] sm:$0xff] }
 0x1f6   : > { %1093 = vmatpush.msra.mxu3 %v1062_v16 }
 0x1f7   : > { %v838_v21 = vadd.f32 %v835_v20, %v801_v18  ;;  %v1061_v18 = vld [vmem:[%s2236_s7] sm:$0xff] }
 0x1f8   : > { %1094 = vmatpush.msra.mxu3 %v1061_v18 }
 0x1f9   : > { %v874_v24 = vadd.f32 %v871_v23, %v838_v21 }
 0x1fb   : > { %v879_v25 = vadd.f32 %v1297_v22, %v874_v24 }
 0x1fd   : > { %v880_v26 = vmax.f32 %v879_v25, 0.0 }
 0x1ff   : > { %882 = vrot.lane.b32.xlu0 %v880_v26, %s1363_s19  ;;  %s1113_s19 = sshll.u32 %s1109_s13, 4  ;;  %s1114_s19 = int_to_ptr.hbm [resolvable:$true] %s1113_s19 }
 0x200   : > { %s1312_s22 = sshra.s32 %s1114_s19, 4  ;;  %s1313_s22 = int_to_ptr.hbm [resolvable:$true] %s1312_s22 }
 0x201   : > { %s1314_s23 = scalar_lea.hbm %s1313_s22, 1  ;;  %p1319_p0 = scmp.lt.s32.totalorder %s1313_s22, %s2237_s8 }
 0x202   : > { %p1315_p11 = scmp.ne.s32.totalorder %s1313_s22, %s1314_s23  ;;  %p1320_p1 = scmp.lt.s32.totalorder %s1318_s26, %s1314_s23 }
 0x204   : > { %p1316_p12 = pnand %p1315_p11, %p1447_p5  ;;  %p1321_p2 = por %p1320_p1, %p1319_p0 }
 0x206   : > { %p1317_p13 = pneg %p1316_p12 }
 0x208   : > { %p1322_p3 = pnand %p1321_p2, %p1317_p13 }
 0x271   : > { %v883_v50 = vpop.permute.xlu0 %882 }
 0x272   : > { %v885_v51 = vmax.f32 %v880_v26, %v883_v50 }
 0x274   : > { %v887_v52 = vrot.slane %v885_v51, 1 }
 0x276   : > { %v889_v8 = vmax.f32 %v885_v51, %v887_v52 }
 0x278   : > { %v908_v11 = vrot.slane %v889_v8, 2  ;;  %1231 = vmatmul.msk.f32.vlgmr.msrb.gmra.mxu1 %vm909_vm7, %v889_v8  ;;  %v996_v48 = vrot.slane %v889_v8, 6  ;;  %v963_v17 = vrot.slane %v889_v8, 4 }
 0x27a   : > { %1230 = vmatmul.msk.f32.vlgmr.msrb.gmra.mxu0 %vm909_vm7, %v908_v11 }
 0x280   : > { %1249 = vmatmul.msk.f32.vlgmr.msra.gmra.mxu1 %vm909_vm7, %v996_v48 }
 0x282   : > { %1240 = vmatmul.msk.f32.vlgmr.msra.gmra.mxu0 %vm909_vm7, %v963_v17 }
 0x2f5   : > { %v951_v6 = vpop.f32.mrf.mxu1 }
 0x2f7   : > { %v929_v7 = vpop.f32.mrf.mxu0 }
 0x2f8   : > { %v952_v9 = vadd.f32 %v951_v6, %v929_v7 }
 0x2fd   : > { %v1016_v13 = vpop.f32.mrf.mxu1 }
 0x2ff   : > { %v983_v10 = vpop.f32.mrf.mxu0 }
 0x300   : > { %v986_v12 = vadd.f32 %v983_v10, %v952_v9 }
 0x302   : > { %v1019_v14 = vadd.f32 %v1016_v13, %v986_v12 }
 0x304   : > { %v1020_v15 = vmax.f32 %v1019_v14, 0.0 }
 0x306   : > { %1250 = vmatmul.msk.f32.vlgmr.msrb.gmra.mxu2 %vm1036_vm8, %v1020_v15 }
 0x389   : > { %v1057_v20 = vpop.f32.mrf.mxu2 }
 0x38a   : > { %v1060_v21 = vmax.f32 %v1057_v20, 0.0 }
 0x38c   : > { %1252 = vmatmul.msk.f32.vlgmr.msra.gmra.mxu3 %vm1072_vm9, %v1060_v21 }
 0x40f   : > { %v1096_v22 = vpop.f32.mrf.mxu3 }
 0x410   : > { %1099 = vst [vmem:[%s297_s17] sm:$0x1] %v1096_v22 }
 0x411   : > { %1325 = shalt.err (!%p1322_p3)
}
 0x412   : > { %1256 = dma.vmem_to_hbm [thread:$0]  (%p1447_p5), %s1112_s20, 16, %s1114_s19, %s1101_s21  }
 0x413 PF: > { %p1262_p4 = scmp.ge.s32.totalorder %s1360_s30, 2  ;;  %s1125_s10 = sand.u32 1, %s1348_s27  }
 0x414   : > { %s1126_s12 = scalar_lea.sflag [#allocation3], %s1125_s10 }
 0x415   : > { %p1259_p7 = pnand %p1262_p4, %p1451_p6 }
 0x417   : > { %p1260_p8 = pneg %p1259_p7 }
 0x419   : > { %1343 = dma.done.wait (%p1260_p8), %s1126_s12, 16  }
 0x41a   : > { %1345 = vsyncadd (%p1260_p8), %s1126_s12, 4294967280  ;;  %p18_p9 = scmp.ge.s32.totalorder %s1434_s11, 4   ;;  %s2240_s27 = smov %s1352_s28 }
 0x41b   : > { %s2241_s28 = smov %s1356_s29  ;;  %s2242_s29 = smov %s1445_s14 }
 0x41c   : > { %s2243_s30 = smov %s1434_s11  ;;  %20 = sbr.rel (!%p18_p9) target bundleno = 3 (0x3), region = 94 }
 0x421   :  { %1131 = vsyncpa [#allocation3], 1 }
 0x422   :  { %1133 = vsyncpa [#allocation3 + $0x1], 1 }

</bundles_post_ra>
